<compile_context>
chip_gen: v7x
topology: tpu7x:2x2x1
jax: 0.10.0
libtpu: 0.0.40
codegen_flags: <defaults>
</compile_context>

<pallas_src>
import math
import functools

import jax
import jax.numpy as jnp
from jax.experimental import pallas as pl
from jax.experimental.pallas import tpu as pltpu


def _mha_kernel(q_ref, k_ref, v_ref,
                wq_ref, bq_ref, wk_ref, bk_ref, wv_ref, bv_ref,
                wo_ref, bo_ref,
                o_ref,
                *, num_heads: int, head_dim: int):
    Bb, Nq, E = q_ref.shape
    _, Nk, _ = k_ref.shape

    # --- Projections: fold the batch block into the matmul rows. -----------
    q2 = q_ref[...].reshape(Bb * Nq, E)
    k2 = k_ref[...].reshape(Bb * Nk, E)
    v2 = v_ref[...].reshape(Bb * Nk, E)

    # (1/sqrt(head_dim) is already folded into wq/bq by the wrapper.)
    qp = jnp.dot(q2, wq_ref[...], preferred_element_type=jnp.float32) + bq_ref[...]
    kp = jnp.dot(k2, wk_ref[...], preferred_element_type=jnp.float32) + bk_ref[...]
    vp = jnp.dot(v2, wv_ref[...], preferred_element_type=jnp.float32) + bv_ref[...]

    internal_dim = num_heads * head_dim
    qp3 = qp.reshape(Bb, Nq, internal_dim)
    kp3 = kp.reshape(Bb, Nk, internal_dim)
    vp3 = vp.reshape(Bb, Nk, internal_dim)

    # --- Separate heads into one combined batch axis g = h*Bb + b. ---------
    def gather_heads(x3):
        return jnp.concatenate(
            [x3[:, :, h * head_dim:(h + 1) * head_dim] for h in range(num_heads)],
            axis=0)                                   # (H*Bb, N, hd)

    qh = gather_heads(qp3)
    kh = gather_heads(kp3)
    vh = gather_heads(vp3)

    # --- Batched scaled-dot-product attention (scale pre-folded). ----------
    s = jnp.einsum('gqd,gkd->gqk', qh, kh,
                   preferred_element_type=jnp.float32)          # (H*Bb, Nq, Nk)
    m = jnp.max(s, axis=-1, keepdims=True)
    p = jnp.exp(s - m)
    denom = jnp.sum(p, axis=-1, keepdims=True)
    # Exact reciprocal to keep float32 parity with the reference softmax.
    p = p * pl.reciprocal(denom, approx=False)
    o = jnp.einsum('gqk,gkd->gqd', p, vh,
                   preferred_element_type=jnp.float32)          # (H*Bb, Nq, hd)

    # --- Merge heads back to (Bb*Nq, internal_dim) and project once. -------
    o_merged = jnp.concatenate(
        [o[h * Bb:(h + 1) * Bb].reshape(Bb * Nq, head_dim) for h in range(num_heads)],
        axis=-1)                                                # (Bb*Nq, I)

    out = jnp.dot(o_merged, wo_ref[...],
                  preferred_element_type=jnp.float32) + bo_ref[...]

    o_ref[...] = out.reshape(Bb, Nq, E).astype(o_ref.dtype)


def multi_head_attn(q, k, v, params, *, num_heads: int, batch_block=None):
    """Pallas forward pass of MultiHeadAttn.  q, k, v: (B, N, E)."""
    B, Nq, E = q.shape
    _, Nk, _ = k.shape
    wq, bq, wk, bk, wv, bv, wo, bo = params
    internal_dim = wq.shape[1]
    head_dim = internal_dim // num_heads

    # Fold the attention scale into the q projection (free in the wrapper).
    scale = 1.0 / math.sqrt(head_dim)
    wq_s = (wq * scale).astype(wq.dtype)
    bq_s = (bq * scale).astype(bq.dtype)

    # Default: whole batch in one fat grid step (single-TC v5e/v6e).
    # On v7x pass batch_block = pl.cdiv(B, 2) so both TensorCores get work.
    if batch_block is None:
        batch_block = B
    batch_block = min(batch_block, B)
    assert B % batch_block == 0, "batch_block must divide B"
    grid = (B // batch_block,)

    kernel = functools.partial(_mha_kernel, num_heads=num_heads,
                               head_dim=head_dim)

    # Weights/biases are resident across the (usually length-1) grid.
    def wspec(shape):
        return pl.BlockSpec(shape, lambda b: tuple(0 for _ in shape))

    return pl.pallas_call(
        kernel,
        out_shape=jax.ShapeDtypeStruct((B, Nq, E), q.dtype),
        grid=grid,
        in_specs=[
            pl.BlockSpec((batch_block, Nq, E), lambda b: (b, 0, 0)),   # q
            pl.BlockSpec((batch_block, Nk, E), lambda b: (b, 0, 0)),   # k
            pl.BlockSpec((batch_block, Nk, E), lambda b: (b, 0, 0)),   # v
            wspec(wq.shape), wspec(bq.shape),                          # q_proj
            wspec(wk.shape), wspec(bk.shape),                          # k_proj
            wspec(wv.shape), wspec(bv.shape),                          # v_proj
            wspec(wo.shape), wspec(bo.shape),                          # out_proj
        ],
        out_specs=pl.BlockSpec((batch_block, Nq, E), lambda b: (b, 0, 0)),
        compiler_params=pltpu.CompilerParams(
            dimension_semantics=("parallel",)),
    )(q, k, v, wq_s, bq_s, wk, bk, wv, bv, wo, bo)


def multi_head_attn_ref(q, k, v, params, *, num_heads: int):
    """Pure-JAX reference matching the PyTorch forward exactly."""
    wq, bq, wk, bk, wv, bv, wo, bo = params
    internal_dim = wq.shape[1]
    head_dim = internal_dim // num_heads
    B, Nq, _ = q.shape

    def proj(x, w, b):
        return jnp.einsum('bne,ei->bni', x, w) + b  # bias (1, I) broadcasts

    def split_heads(x):
        b, n, c = x.shape
        return x.reshape(b, n, num_heads, c // num_heads).transpose(0, 2, 1, 3)

    qp, kp, vp = proj(q, wq, bq), proj(k, wk, bk), proj(v, wv, bv)
    qh, kh, vh = split_heads(qp), split_heads(kp), split_heads(vp)
    attn = jnp.einsum('bhqd,bhkd->bhqk', qh, kh) / math.sqrt(head_dim)
    attn = jax.nn.softmax(attn, axis=-1)
    out = jnp.einsum('bhqk,bhkd->bhqd', attn, vh)
    out = out.transpose(0, 2, 1, 3).reshape(B, Nq, internal_dim)
    return jnp.einsum('bni,ie->bne', out, wo) + bo


def init_params(key, embed_dim, internal_dim):
    """Deterministic synthetic parameters (JAX (in, out) layout)."""
    keys = jax.random.split(key, 8)
    s_in = 1.0 / math.sqrt(embed_dim)
    s_int = 1.0 / math.sqrt(internal_dim)
    wq = jax.random.uniform(keys[0], (embed_dim, internal_dim), jnp.float32, -s_in, s_in)
    bq = jax.random.uniform(keys[1], (1, internal_dim), jnp.float32, -s_in, s_in)
    wk = jax.random.uniform(keys[2], (embed_dim, internal_dim), jnp.float32, -s_in, s_in)
    bk = jax.random.uniform(keys[3], (1, internal_dim), jnp.float32, -s_in, s_in)
    wv = jax.random.uniform(keys[4], (embed_dim, internal_dim), jnp.float32, -s_in, s_in)
    bv = jax.random.uniform(keys[5], (1, internal_dim), jnp.float32, -s_in, s_in)
    wo = jax.random.uniform(keys[6], (internal_dim, embed_dim), jnp.float32, -s_int, s_int)
    bo = jax.random.uniform(keys[7], (1, embed_dim), jnp.float32, -s_int, s_int)
    return (wq, bq, wk, bk, wv, bv, wo, bo)


if __name__ == "__main__":
    # Small shapes: batch=2, seq=8, embed_dim=32, num_heads=4, downsample_rate=1.
    B, N, E = 2, 8, 32
    num_heads = 4
    downsample_rate = 1
    internal_dim = E // downsample_rate

    key = jax.random.PRNGKey(0)
    kq, kk, kv, kp = jax.random.split(key, 4)
    q = jax.random.normal(kq, (B, N, E), jnp.float32)
    k = jax.random.normal(kk, (B, N, E), jnp.float32)
    v = jax.random.normal(kv, (B, N, E), jnp.float32)
    params = init_params(kp, E, internal_dim)

    out = multi_head_attn(q, k, v, params, num_heads=num_heads)
    out = jax.block_until_ready(out)

    ref = multi_head_attn_ref(q, k, v, params, num_heads=num_heads)
    assert out.shape == (B, N, E)
    assert jnp.allclose(out, ref, atol=1e-4, rtol=1e-4), "mismatch vs reference"

    print("KERNEL_OK")
</pallas_src>

<mosaic_0001>
module attributes {stable_mosaic.version = 11 : i64} {
  func.func @_mha_kernel(%arg0: i32, %arg1: memref<2x8x32xf32, #tpu.memory_space<vmem>>, %arg2: memref<2x8x32xf32, #tpu.memory_space<vmem>>, %arg3: memref<2x8x32xf32, #tpu.memory_space<vmem>>, %arg4: memref<32x32xf32, #tpu.memory_space<vmem>>, %arg5: memref<1x32xf32, #tpu.memory_space<vmem>>, %arg6: memref<32x32xf32, #tpu.memory_space<vmem>>, %arg7: memref<1x32xf32, #tpu.memory_space<vmem>>, %arg8: memref<32x32xf32, #tpu.memory_space<vmem>>, %arg9: memref<1x32xf32, #tpu.memory_space<vmem>>, %arg10: memref<32x32xf32, #tpu.memory_space<vmem>>, %arg11: memref<1x32xf32, #tpu.memory_space<vmem>>, %arg12: memref<2x8x32xf32, #tpu.memory_space<vmem>>) attributes {dimension_semantics = [#tpu.dimension_semantics<parallel>], iteration_bounds = array<i64: 1>, scalar_prefetch = 0 : i64, scratch_operands = 0 : i64, tpu.core_type = #tpu.core_type<tc>, window_params = [{transform_indices = @transform_0, window_bounds = array<i64: 2, 8, 32>}, {transform_indices = @transform_1, window_bounds = array<i64: 2, 8, 32>}, {transform_indices = @transform_2, window_bounds = array<i64: 2, 8, 32>}, {pipeline_mode = #tpu.pipeline_mode<synchronous>, transform_indices = @transform_3, window_bounds = array<i64: 32, 32>}, {pipeline_mode = #tpu.pipeline_mode<synchronous>, transform_indices = @transform_4, window_bounds = array<i64: 1, 32>}, {pipeline_mode = #tpu.pipeline_mode<synchronous>, transform_indices = @transform_5, window_bounds = array<i64: 32, 32>}, {pipeline_mode = #tpu.pipeline_mode<synchronous>, transform_indices = @transform_6, window_bounds = array<i64: 1, 32>}, {pipeline_mode = #tpu.pipeline_mode<synchronous>, transform_indices = @transform_7, window_bounds = array<i64: 32, 32>}, {pipeline_mode = #tpu.pipeline_mode<synchronous>, transform_indices = @transform_8, window_bounds = array<i64: 1, 32>}, {pipeline_mode = #tpu.pipeline_mode<synchronous>, transform_indices = @transform_9, window_bounds = array<i64: 32, 32>}, {pipeline_mode = #tpu.pipeline_mode<synchronous>, transform_indices = @transform_10, window_bounds = array<i64: 1, 32>}, {transform_indices = @transform_11, window_bounds = array<i64: 2, 8, 32>}]} {
    %c0 = arith.constant 0 : index
    %c0_0 = arith.constant 0 : index
    %c0_1 = arith.constant 0 : index
    %0 = vector.load %arg1[%c0, %c0_0, %c0_1] : memref<2x8x32xf32, #tpu.memory_space<vmem>>, vector<2x8x32xf32>
    %1 = vector.shape_cast %0 : vector<2x8x32xf32> to vector<16x32xf32>
    %c0_2 = arith.constant 0 : index
    %c0_3 = arith.constant 0 : index
    %c0_4 = arith.constant 0 : index
    %2 = vector.load %arg2[%c0_2, %c0_3, %c0_4] : memref<2x8x32xf32, #tpu.memory_space<vmem>>, vector<2x8x32xf32>
    %3 = vector.shape_cast %2 : vector<2x8x32xf32> to vector<16x32xf32>
    %c0_5 = arith.constant 0 : index
    %c0_6 = arith.constant 0 : index
    %c0_7 = arith.constant 0 : index
    %4 = vector.load %arg3[%c0_5, %c0_6, %c0_7] : memref<2x8x32xf32, #tpu.memory_space<vmem>>, vector<2x8x32xf32>
    %5 = vector.shape_cast %4 : vector<2x8x32xf32> to vector<16x32xf32>
    %c0_8 = arith.constant 0 : index
    %c0_9 = arith.constant 0 : index
    %6 = vector.load %arg4[%c0_8, %c0_9] : memref<32x32xf32, #tpu.memory_space<vmem>>, vector<32x32xf32>
    %cst = arith.constant dense<0.000000e+00> : vector<16x32xf32>
    %7 = tpu.matmul %1, %6, %cst {dimension_numbers = #tpu.dot_dimension_numbers<[1], [0], [0], [1], [0, 0, 1, 1], [], []>} : vector<16x32xf32>, vector<32x32xf32>, vector<16x32xf32> -> vector<16x32xf32>
    %c0_10 = arith.constant 0 : index
    %c0_11 = arith.constant 0 : index
    %8 = vector.load %arg5[%c0_10, %c0_11] : memref<1x32xf32, #tpu.memory_space<vmem>>, vector<1x32xf32>
    %9 = vector.broadcast %8 : vector<1x32xf32> to vector<16x32xf32>
    %10 = arith.addf %7, %9 : vector<16x32xf32>
    %c0_12 = arith.constant 0 : index
    %c0_13 = arith.constant 0 : index
    %11 = vector.load %arg6[%c0_12, %c0_13] : memref<32x32xf32, #tpu.memory_space<vmem>>, vector<32x32xf32>
    %cst_14 = arith.constant dense<0.000000e+00> : vector<16x32xf32>
    %12 = tpu.matmul %3, %11, %cst_14 {dimension_numbers = #tpu.dot_dimension_numbers<[1], [0], [0], [1], [0, 0, 1, 1], [], []>} : vector<16x32xf32>, vector<32x32xf32>, vector<16x32xf32> -> vector<16x32xf32>
    %c0_15 = arith.constant 0 : index
    %c0_16 = arith.constant 0 : index
    %13 = vector.load %arg7[%c0_15, %c0_16] : memref<1x32xf32, #tpu.memory_space<vmem>>, vector<1x32xf32>
    %14 = vector.broadcast %13 : vector<1x32xf32> to vector<16x32xf32>
    %15 = arith.addf %12, %14 : vector<16x32xf32>
    %c0_17 = arith.constant 0 : index
    %c0_18 = arith.constant 0 : index
    %16 = vector.load %arg8[%c0_17, %c0_18] : memref<32x32xf32, #tpu.memory_space<vmem>>, vector<32x32xf32>
    %cst_19 = arith.constant dense<0.000000e+00> : vector<16x32xf32>
    %17 = tpu.matmul %5, %16, %cst_19 {dimension_numbers = #tpu.dot_dimension_numbers<[1], [0], [0], [1], [0, 0, 1, 1], [], []>} : vector<16x32xf32>, vector<32x32xf32>, vector<16x32xf32> -> vector<16x32xf32>
    %c0_20 = arith.constant 0 : index
    %c0_21 = arith.constant 0 : index
    %18 = vector.load %arg9[%c0_20, %c0_21] : memref<1x32xf32, #tpu.memory_space<vmem>>, vector<1x32xf32>
    %19 = vector.broadcast %18 : vector<1x32xf32> to vector<16x32xf32>
    %20 = arith.addf %17, %19 : vector<16x32xf32>
    %21 = vector.shape_cast %10 : vector<16x32xf32> to vector<2x8x32xf32>
    %22 = vector.shape_cast %15 : vector<16x32xf32> to vector<2x8x32xf32>
    %23 = vector.shape_cast %20 : vector<16x32xf32> to vector<2x8x32xf32>
    %24 = vector.extract_strided_slice %21 {offsets = [0, 0, 0], sizes = [2, 8, 8], strides = [1, 1, 1]} : vector<2x8x32xf32> to vector<2x8x8xf32>
    %25 = vector.extract_strided_slice %21 {offsets = [0, 0, 8], sizes = [2, 8, 8], strides = [1, 1, 1]} : vector<2x8x32xf32> to vector<2x8x8xf32>
    %26 = vector.extract_strided_slice %21 {offsets = [0, 0, 16], sizes = [2, 8, 8], strides = [1, 1, 1]} : vector<2x8x32xf32> to vector<2x8x8xf32>
    %27 = vector.extract_strided_slice %21 {offsets = [0, 0, 24], sizes = [2, 8, 8], strides = [1, 1, 1]} : vector<2x8x32xf32> to vector<2x8x8xf32>
    %28 = tpu.concatenate %24, %25, %26, %27 in 0 : vector<2x8x8xf32>, vector<2x8x8xf32>, vector<2x8x8xf32>, vector<2x8x8xf32> -> vector<8x8x8xf32>
    %29 = vector.extract_strided_slice %22 {offsets = [0, 0, 0], sizes = [2, 8, 8], strides = [1, 1, 1]} : vector<2x8x32xf32> to vector<2x8x8xf32>
    %30 = vector.extract_strided_slice %22 {offsets = [0, 0, 8], sizes = [2, 8, 8], strides = [1, 1, 1]} : vector<2x8x32xf32> to vector<2x8x8xf32>
    %31 = vector.extract_strided_slice %22 {offsets = [0, 0, 16], sizes = [2, 8, 8], strides = [1, 1, 1]} : vector<2x8x32xf32> to vector<2x8x8xf32>
    %32 = vector.extract_strided_slice %22 {offsets = [0, 0, 24], sizes = [2, 8, 8], strides = [1, 1, 1]} : vector<2x8x32xf32> to vector<2x8x8xf32>
    %33 = tpu.concatenate %29, %30, %31, %32 in 0 : vector<2x8x8xf32>, vector<2x8x8xf32>, vector<2x8x8xf32>, vector<2x8x8xf32> -> vector<8x8x8xf32>
    %34 = vector.extract_strided_slice %23 {offsets = [0, 0, 0], sizes = [2, 8, 8], strides = [1, 1, 1]} : vector<2x8x32xf32> to vector<2x8x8xf32>
    %35 = vector.extract_strided_slice %23 {offsets = [0, 0, 8], sizes = [2, 8, 8], strides = [1, 1, 1]} : vector<2x8x32xf32> to vector<2x8x8xf32>
    %36 = vector.extract_strided_slice %23 {offsets = [0, 0, 16], sizes = [2, 8, 8], strides = [1, 1, 1]} : vector<2x8x32xf32> to vector<2x8x8xf32>
    %37 = vector.extract_strided_slice %23 {offsets = [0, 0, 24], sizes = [2, 8, 8], strides = [1, 1, 1]} : vector<2x8x32xf32> to vector<2x8x8xf32>
    %38 = tpu.concatenate %34, %35, %36, %37 in 0 : vector<2x8x8xf32>, vector<2x8x8xf32>, vector<2x8x8xf32>, vector<2x8x8xf32> -> vector<8x8x8xf32>
    "tpu.trace_start"() <{level = 10 : i32, message = "gqd,gkd->gqk"}> : () -> ()
    %cst_22 = arith.constant dense<0.000000e+00> : vector<8x8x8xf32>
    %39 = tpu.matmul %28, %33, %cst_22 {dimension_numbers = #tpu.dot_dimension_numbers<[2], [2], [1], [1], [0, 0, 0, 1, 1, 1], [0], [0]>} : vector<8x8x8xf32>, vector<8x8x8xf32>, vector<8x8x8xf32> -> vector<8x8x8xf32>
    "tpu.trace_stop"() : () -> ()
    %cst_23 = arith.constant dense<0xFF800000> : vector<8x8xf32>
    %40 = vector.multi_reduction <maximumf>, %39, %cst_23 [2] : vector<8x8x8xf32> to vector<8x8xf32>
    %41 = vector.shape_cast %40 : vector<8x8xf32> to vector<8x8x1xf32>
    %42 = vector.broadcast %41 : vector<8x8x1xf32> to vector<8x8x8xf32>
    %43 = arith.subf %39, %42 : vector<8x8x8xf32>
    %44 = math.exp %43 : vector<8x8x8xf32>
    %cst_24 = arith.constant dense<0.000000e+00> : vector<8x8xf32>
    %45 = vector.multi_reduction <add>, %44, %cst_24 [2] : vector<8x8x8xf32> to vector<8x8xf32>
    %46 = vector.shape_cast %45 : vector<8x8xf32> to vector<8x8x1xf32>
    %47 = tpu.reciprocal %46 : vector<8x8x1xf32> -> vector<8x8x1xf32>
    %48 = vector.broadcast %47 : vector<8x8x1xf32> to vector<8x8x8xf32>
    %49 = arith.mulf %44, %48 : vector<8x8x8xf32>
    "tpu.trace_start"() <{level = 10 : i32, message = "gqk,gkd->gqd"}> : () -> ()
    %cst_25 = arith.constant dense<0.000000e+00> : vector<8x8x8xf32>
    %50 = tpu.matmul %49, %38, %cst_25 {dimension_numbers = #tpu.dot_dimension_numbers<[2], [1], [1], [2], [0, 0, 0, 1, 1, 2], [0], [0]>} : vector<8x8x8xf32>, vector<8x8x8xf32>, vector<8x8x8xf32> -> vector<8x8x8xf32>
    "tpu.trace_stop"() : () -> ()
    %51 = vector.extract_strided_slice %50 {offsets = [0, 0, 0], sizes = [2, 8, 8], strides = [1, 1, 1]} : vector<8x8x8xf32> to vector<2x8x8xf32>
    %52 = vector.shape_cast %51 : vector<2x8x8xf32> to vector<16x8xf32>
    %53 = vector.extract_strided_slice %50 {offsets = [2, 0, 0], sizes = [2, 8, 8], strides = [1, 1, 1]} : vector<8x8x8xf32> to vector<2x8x8xf32>
    %54 = vector.shape_cast %53 : vector<2x8x8xf32> to vector<16x8xf32>
    %55 = vector.extract_strided_slice %50 {offsets = [4, 0, 0], sizes = [2, 8, 8], strides = [1, 1, 1]} : vector<8x8x8xf32> to vector<2x8x8xf32>
    %56 = vector.shape_cast %55 : vector<2x8x8xf32> to vector<16x8xf32>
    %57 = vector.extract_strided_slice %50 {offsets = [6, 0, 0], sizes = [2, 8, 8], strides = [1, 1, 1]} : vector<8x8x8xf32> to vector<2x8x8xf32>
    %58 = vector.shape_cast %57 : vector<2x8x8xf32> to vector<16x8xf32>
    %59 = tpu.concatenate %52, %54, %56, %58 in 1 : vector<16x8xf32>, vector<16x8xf32>, vector<16x8xf32>, vector<16x8xf32> -> vector<16x32xf32>
    %c0_26 = arith.constant 0 : index
    %c0_27 = arith.constant 0 : index
    %60 = vector.load %arg10[%c0_26, %c0_27] : memref<32x32xf32, #tpu.memory_space<vmem>>, vector<32x32xf32>
    %cst_28 = arith.constant dense<0.000000e+00> : vector<16x32xf32>
    %61 = tpu.matmul %59, %60, %cst_28 {dimension_numbers = #tpu.dot_dimension_numbers<[1], [0], [0], [1], [0, 0, 1, 1], [], []>} : vector<16x32xf32>, vector<32x32xf32>, vector<16x32xf32> -> vector<16x32xf32>
    %c0_29 = arith.constant 0 : index
    %c0_30 = arith.constant 0 : index
    %62 = vector.load %arg11[%c0_29, %c0_30] : memref<1x32xf32, #tpu.memory_space<vmem>>, vector<1x32xf32>
    %63 = vector.broadcast %62 : vector<1x32xf32> to vector<16x32xf32>
    %64 = arith.addf %61, %63 : vector<16x32xf32>
    %65 = vector.shape_cast %64 : vector<16x32xf32> to vector<2x8x32xf32>
    %c0_31 = arith.constant 0 : index
    %c0_32 = arith.constant 0 : index
    %c0_33 = arith.constant 0 : index
    %66 = vector.load %arg12[%c0_31, %c0_32, %c0_33] : memref<2x8x32xf32, #tpu.memory_space<vmem>>, vector<2x8x32xf32>
    tpu.vector_store %arg12[%c0_31, %c0_32, %c0_33], %65 {strides = array<i32>} : memref<2x8x32xf32, #tpu.memory_space<vmem>>, vector<2x8x32xf32>,
    return
  }
  func.func @transform_0(%arg0: i32) -> (i32, i32, i32) {
    %c0_i32 = arith.constant 0 : i32
    %c0_i32_0 = arith.constant 0 : i32
    %c0_i32_1 = arith.constant 0 : i32
    return %arg0, %c0_i32, %c0_i32_0 : i32, i32, i32
  }
  func.func @transform_1(%arg0: i32) -> (i32, i32, i32) {
    %c0_i32 = arith.constant 0 : i32
    %c0_i32_0 = arith.constant 0 : i32
    %c0_i32_1 = arith.constant 0 : i32
    return %arg0, %c0_i32, %c0_i32_0 : i32, i32, i32
  }
  func.func @transform_2(%arg0: i32) -> (i32, i32, i32) {
    %c0_i32 = arith.constant 0 : i32
    %c0_i32_0 = arith.constant 0 : i32
    %c0_i32_1 = arith.constant 0 : i32
    return %arg0, %c0_i32, %c0_i32_0 : i32, i32, i32
  }
  func.func @transform_3(%arg0: i32) -> (i32, i32) {
    %c0_i32 = arith.constant 0 : i32
    %c0_i32_0 = arith.constant 0 : i32
    %c0_i32_1 = arith.constant 0 : i32
    return %c0_i32, %c0_i32_0 : i32, i32
  }
  func.func @transform_4(%arg0: i32) -> (i32, i32) {
    %c0_i32 = arith.constant 0 : i32
    %c0_i32_0 = arith.constant 0 : i32
    %c0_i32_1 = arith.constant 0 : i32
    return %c0_i32, %c0_i32_0 : i32, i32
  }
  func.func @transform_5(%arg0: i32) -> (i32, i32) {
    %c0_i32 = arith.constant 0 : i32
    %c0_i32_0 = arith.constant 0 : i32
    %c0_i32_1 = arith.constant 0 : i32
    return %c0_i32, %c0_i32_0 : i32, i32
  }
  func.func @transform_6(%arg0: i32) -> (i32, i32) {
    %c0_i32 = arith.constant 0 : i32
    %c0_i32_0 = arith.constant 0 : i32
    %c0_i32_1 = arith.constant 0 : i32
    return %c0_i32, %c0_i32_0 : i32, i32
  }
  func.func @transform_7(%arg0: i32) -> (i32, i32) {
    %c0_i32 = arith.constant 0 : i32
    %c0_i32_0 = arith.constant 0 : i32
    %c0_i32_1 = arith.constant 0 : i32
    return %c0_i32, %c0_i32_0 : i32, i32
  }
  func.func @transform_8(%arg0: i32) -> (i32, i32) {
    %c0_i32 = arith.constant 0 : i32
    %c0_i32_0 = arith.constant 0 : i32
    %c0_i32_1 = arith.constant 0 : i32
    return %c0_i32, %c0_i32_0 : i32, i32
  }
  func.func @transform_9(%arg0: i32) -> (i32, i32) {
    %c0_i32 = arith.constant 0 : i32
    %c0_i32_0 = arith.constant 0 : i32
    %c0_i32_1 = arith.constant 0 : i32
    return %c0_i32, %c0_i32_0 : i32, i32
  }
  func.func @transform_10(%arg0: i32) -> (i32, i32) {
    %c0_i32 = arith.constant 0 : i32
    %c0_i32_0 = arith.constant 0 : i32
    %c0_i32_1 = arith.constant 0 : i32
    return %c0_i32, %c0_i32_0 : i32, i32
  }
  func.func @transform_11(%arg0: i32) -> (i32, i32, i32) {
    %c0_i32 = arith.constant 0 : i32
    %c0_i32_0 = arith.constant 0 : i32
    %c0_i32_1 = arith.constant 0 : i32
    return %arg0, %c0_i32, %c0_i32_0 : i32, i32, i32
  }
}

</mosaic_0001>

<bundles_post_ra>
// kernel: tpu_custom_call.1
= control target key start
LH: loop header
LB: loop body
LE: loop exit
PB: predicated region body
PF: predicated region fallthrough
CT: control target
= control target key end

     0   :  { %16 = vsyncpa [#allocation3], 0  ;;  %s2733_s0 = inlined_call_operand.hbm [shape: f32[2,8,32], index: 0, kind: input, shape index: {}]   ;;  %s2734_s1 = inlined_call_operand.hbm [shape: f32[2,8,32], index: 1, kind: input, shape index: {}]   ;;  %s2735_s2 = inlined_call_operand.hbm [shape: f32[2,8,32], index: 2, kind: input, shape index: {}]   ;;  %s2736_s3 = inlined_call_operand.hbm [shape: f32[32,32], index: 3, kind: input, shape index: {}]   ;;  %s2737_s4 = inlined_call_operand.vmem [shape: f32[1,32], index: 4, kind: input, shape index: {}]   ;;  %s2738_s5 = inlined_call_operand.hbm [shape: f32[32,32], index: 5, kind: input, shape index: {}]   ;;  %s2739_s6 = inlined_call_operand.vmem [shape: f32[1,32], index: 6, kind: input, shape index: {}]   ;;  %s2740_s7 = inlined_call_operand.hbm [shape: f32[32,32], index: 7, kind: input, shape index: {}]   ;;  %s2741_s8 = inlined_call_operand.hbm [shape: f32[1,32], index: 8, kind: input, shape index: {}]   ;;  %s2742_s9 = inlined_call_operand.vmem [shape: f32[32,32], index: 9, kind: input, shape index: {}]   ;;  %s2743_s10 = inlined_call_operand.vmem [shape: f32[1,32], index: 10, kind: input, shape index: {}]   ;;  %s2744_s11 = inlined_call_operand.hbm [shape: f32[2,8,32], index: 11, kind: output, shape index: {}]  }
   0x1   :  { %17 = vsyncpa [#allocation6], 0 }
   0x2   :  { %18 = vsyncpa [#allocation9], 0 }
   0x3   :  { %19 = vsyncpa [#allocation12], 0 }
   0x4   :  { %20 = vsyncpa [#allocation4], 0  ;;  %s2357_s17 = smov [#allocation5]   ;;  %s2358_s19 = smov [#allocation8]  }
   0x5   :  { %s38_s18 = sshll.u32 %s2357_s17, 4  ;;  %s62_s20 = sshll.u32 %s2358_s19, 4  ;;  %s39_s18 = int_to_ptr.vmem [resolvable:$true] %s38_s18  ;;  %s2434_s20 = int_to_ptr.vmem [resolvable:$true] %s62_s20 }
   0x6   :  { %s2171_s23 = scalar_lea.hbm %s2734_s1, 256 }
   0x7   :  { %p2172_p0 = scmp.ne.s32.totalorder %s2734_s1, %s2171_s23  ;;  %p2175_p1 = scmp.lt.u32.totalorder %s2171_s23, %s2734_s1 }
   0x9   :  { %p2177_p2 = pnand %p2175_p1, %p2172_p0 }
   0xb   :  { %2180 = shalt.err (!%p2177_p2)
}
   0xc   :  { %s2181_s28 = scalar_lea.vmem %s39_s18, 256  ;;  %p2186_p4 = scmp.lt.s32.totalorder %s39_s18, %s39_s18 }
   0xd   :  { %p2182_p3 = scmp.ne.s32.totalorder %s39_s18, %s2181_s28  ;;  %p2187_p5 = scmp.lt.s32.totalorder %s2181_s28, %s2181_s28 }
   0xf   :  { %p2188_p6 = por %p2187_p5, %p2186_p4 }
  0x11   :  { %p2189_p7 = pnand %p2188_p6, %p2182_p3 }
  0x13   :  { %2192 = shalt.err (!%p2189_p7)
}
  0x14   :  { %s2359_s29 = smov 128   ;;  %s2360_s30 = smov 8  }
  0x15   :  { %44 = dma.hbm_to_vmem [thread:$0]  %s2734_s1, 256, %s39_s18, [#allocation6], %s2359_s29, %s2359_s29, %s2360_s30  }
  0x16   :  { %s2193_s16 = scalar_lea.hbm %s2736_s3, 512 }
  0x17   :  { %p2194_p8 = scmp.ne.s32.totalorder %s2736_s3, %s2193_s16  ;;  %p2197_p9 = scmp.lt.u32.totalorder %s2193_s16, %s2736_s3 }
  0x19   :  { %p2199_p10 = pnand %p2197_p9, %p2194_p8 }
  0x1b   :  { %2202 = shalt.err (!%p2199_p10)
}
  0x1c   :  { %s2203_s23 = scalar_lea.vmem %s2434_s20, 512  ;;  %p2208_p12 = scmp.lt.s32.totalorder %s2434_s20, %s2434_s20 }
  0x1d   :  { %p2204_p11 = scmp.ne.s32.totalorder %s2434_s20, %s2203_s23  ;;  %p2209_p13 = scmp.lt.s32.totalorder %s2203_s23, %s2203_s23 }
  0x1f   :  { %p2210_p0 = por %p2209_p13, %p2208_p12 }
  0x21   :  { %p2211_p1 = pnand %p2210_p0, %p2204_p11 }
  0x23   :  { %2214 = shalt.err (!%p2211_p1)
}
  0x24   :  { %68 = dma.hbm_to_vmem [thread:$0]  %s2736_s3, 512, %s2434_s20, [#allocation9], %s2359_s29, %s2359_s29, %s2360_s30  }
  0x25   :  { %s2361_s24 = smov [#allocation11]   ;;  %s2362_s26 = smov [#allocation2]  }
  0x26   :  { %s90_s25 = sshll.u32 %s2361_s24, 4  ;;  %s26_s27 = sshll.u32 %s2362_s26, 4  ;;  %s91_s25 = int_to_ptr.vmem [resolvable:$true] %s90_s25  ;;  %s2471_s27 = int_to_ptr.vmem [resolvable:$true] %s26_s27 }
  0x27   :  { %s2215_s13 = scalar_lea.hbm %s2740_s7, 512 }
  0x28   :  { %p2216_p2 = scmp.ne.s32.totalorder %s2740_s7, %s2215_s13  ;;  %p2219_p3 = scmp.lt.u32.totalorder %s2215_s13, %s2740_s7 }
  0x2a   :  { %p2221_p4 = pnand %p2219_p3, %p2216_p2 }
  0x2c   :  { %2224 = shalt.err (!%p2221_p4)
}
  0x2d   :  { %s2225_s3 = scalar_lea.vmem %s91_s25, 512  ;;  %p2230_p6 = scmp.lt.s32.totalorder %s91_s25, %s91_s25 }
  0x2e   :  { %p2226_p5 = scmp.ne.s32.totalorder %s91_s25, %s2225_s3  ;;  %p2231_p7 = scmp.lt.s32.totalorder %s2225_s3, %s2225_s3 }
  0x30   :  { %p2232_p8 = por %p2231_p7, %p2230_p6 }
  0x32   :  { %p2233_p9 = pnand %p2232_p8, %p2226_p5 }
  0x34   :  { %2236 = shalt.err (!%p2233_p9)
}
  0x35   :  { %96 = dma.hbm_to_vmem [thread:$0]  %s2740_s7, 512, %s91_s25, [#allocation12], %s2359_s29, %s2359_s29, %s2360_s30  }
  0x36   :  { %s2237_s23 = scalar_lea.hbm %s2733_s0, 256 }
  0x37   :  { %p2238_p10 = scmp.ne.s32.totalorder %s2733_s0, %s2237_s23  ;;  %p2241_p11 = scmp.lt.u32.totalorder %s2237_s23, %s2733_s0 }
  0x39   :  { %p2243_p12 = pnand %p2241_p11, %p2238_p10 }
  0x3b   :  { %2246 = shalt.err (!%p2243_p12)
}
  0x3c   :  { %s2247_s28 = scalar_lea.vmem %s2471_s27, 256  ;;  %p2252_p0 = scmp.lt.s32.totalorder %s2471_s27, %s2471_s27 }
  0x3d   :  { %p2248_p13 = scmp.ne.s32.totalorder %s2471_s27, %s2247_s28  ;;  %p2253_p1 = scmp.lt.s32.totalorder %s2247_s28, %s2247_s28 }
  0x3f   :  { %p2254_p2 = por %p2253_p1, %p2252_p0 }
  0x41   :  { %p2255_p3 = pnand %p2254_p2, %p2248_p13 }
  0x43   :  { %2258 = shalt.err (!%p2255_p3)
}
  0x44   :  { %32 = dma.hbm_to_vmem [thread:$0]  %s2733_s0, 256, %s2471_s27, [#allocation3], %s2359_s29, %s2359_s29, %s2360_s30  }
  0x45   :  { %s2363_s12 = smov [#allocation7]   ;;  %s2364_s14 = smov [#allocation10]  }
  0x46   :  { %s50_s13 = sshll.u32 %s2363_s12, 4  ;;  %s76_s15 = sshll.u32 %s2364_s14, 4  ;;  %s51_s13 = int_to_ptr.vmem [resolvable:$true] %s50_s13  ;;  %s2508_s15 = int_to_ptr.vmem [resolvable:$true] %s76_s15 }
  0x47   :  { %s2259_s3 = scalar_lea.hbm %s2735_s2, 256 }
  0x48   :  { %p2260_p4 = scmp.ne.s32.totalorder %s2735_s2, %s2259_s3  ;;  %p2263_p5 = scmp.lt.u32.totalorder %s2259_s3, %s2735_s2 }
  0x4a   :  { %p2265_p6 = pnand %p2263_p5, %p2260_p4 }
  0x4c   :  { %2268 = shalt.err (!%p2265_p6)
}
  0x4d   :  { %s2269_s0 = scalar_lea.vmem %s51_s13, 256  ;;  %p2274_p8 = scmp.lt.s32.totalorder %s51_s13, %s51_s13 }
  0x4e   :  { %p2270_p7 = scmp.ne.s32.totalorder %s51_s13, %s2269_s0  ;;  %p2275_p9 = scmp.lt.s32.totalorder %s2269_s0, %s2269_s0 }
  0x50   :  { %p2276_p10 = por %p2275_p9, %p2274_p8 }
  0x52   :  { %p2277_p11 = pnand %p2276_p10, %p2270_p7 }
  0x54   :  { %2280 = shalt.err (!%p2277_p11)
}
  0x55   :  { %56 = dma.hbm_to_vmem [thread:$0]  %s2735_s2, 256, %s51_s13, [#allocation6], %s2359_s29, %s2359_s29, %s2360_s30  }
  0x56   :  { %s2281_s24 = scalar_lea.hbm %s2738_s5, 512 }
  0x57   :  { %p2282_p12 = scmp.ne.s32.totalorder %s2738_s5, %s2281_s24  ;;  %p2285_p13 = scmp.lt.u32.totalorder %s2281_s24, %s2738_s5 }
  0x59   :  { %p2287_p0 = pnand %p2285_p13, %p2282_p12 }
  0x5b   :  { %2290 = shalt.err (!%p2287_p0)
}
  0x5c   :  { %s2291_s12 = scalar_lea.vmem %s2508_s15, 512  ;;  %p2296_p2 = scmp.lt.s32.totalorder %s2508_s15, %s2508_s15 }
  0x5d   :  { %p2292_p1 = scmp.ne.s32.totalorder %s2508_s15, %s2291_s12  ;;  %p2297_p3 = scmp.lt.s32.totalorder %s2291_s12, %s2291_s12 }
  0x5f   :  { %p2298_p4 = por %p2297_p3, %p2296_p2 }
  0x61   :  { %p2299_p5 = pnand %p2298_p4, %p2292_p1 }
  0x63   :  { %2302 = shalt.err (!%p2299_p5)
}
  0x64   :  { %82 = dma.hbm_to_vmem [thread:$0]  %s2738_s5, 512, %s2508_s15, [#allocation9], %s2359_s29, %s2359_s29, %s2360_s30  }
  0x65   :  { %s2365_s14 = smov [#allocation13]   ;;  %s2303_s20 = scalar_lea.hbm %s2741_s8, 16 }
  0x66   :  { %s103_s16 = sshll.u32 %s2365_s14, 4  ;;  %p2304_p6 = scmp.ne.s32.totalorder %s2741_s8, %s2303_s20  ;;  %s104_s16 = int_to_ptr.vmem [resolvable:$true] %s103_s16 }
  0x67   :  { %p2307_p7 = scmp.lt.u32.totalorder %s2303_s20, %s2741_s8 }
  0x69   :  { %p2309_p8 = pnand %p2307_p7, %p2304_p6 }
  0x6b   :  { %2312 = shalt.err (!%p2309_p8)
}
  0x6c   :  { %s2313_s27 = scalar_lea.vmem %s104_s16, 16  ;;  %s2317_s5 = scalar_lea.vmem %s104_s16, 32 }
  0x6d   :  { %p2314_p9 = scmp.ne.s32.totalorder %s104_s16, %s2313_s27  ;;  %p2318_p10 = scmp.lt.s32.totalorder %s104_s16, %s104_s16 }
  0x6e   :  { %p2319_p11 = scmp.lt.s32.totalorder %s2317_s5, %s2313_s27 }
  0x70   :  { %p2320_p12 = por %p2319_p11, %p2318_p10 }
  0x72   :  { %p2321_p13 = pnand %p2320_p12, %p2314_p9 }
  0x74   :  { %2324 = shalt.err (!%p2321_p13)
}
  0x75   :  { %106 = dma.hbm_to_vmem [thread:$0]  %s2741_s8, 16, %s104_s16, [#allocation12]  }
  0x76   :  { %2347 = dma.done.wait [#allocation3], 256  }
  0x77   :  { %2348 = vsyncadd [#allocation3], 4294967040 }
  0x78   :  { %2349 = dma.done.wait [#allocation6], 512  }
  0x79   :  { %2350 = vsyncadd [#allocation6], 4294966784 }
  0x7a   :  { %2351 = dma.done.wait [#allocation9], 1024  }
  0x7b   :  { %2352 = vsyncadd [#allocation9], 4294966272 }
  0x7c   :  { %2353 = dma.done.wait [#allocation12], 528  }
  0x7d   :  { %2354 = vsyncadd [#allocation12], 4294966768  ;;  %v231_v0 = vld [vmem:[#allocation10] sm:$0xff]  ;;  %v232_v1 = vld [vmem:[#allocation10 + $0x8] sm:$0xff]  ;;  %vm149_vm0 = vcmask 261120   ;;  %v2366_v16 = vmov 0.0  }
  0x7e   :  { %v138_v2 = vld [vmem:[#allocation8] sm:$0xff]  ;;  %v2098_v3 = vpack.c.bf16 %v232_v1, %v231_v0  ;;  %v139_v4 = vld [vmem:[#allocation8 + $0x8] sm:$0xff]  ;;  %v233_v5 = vld [vmem:[#allocation10 + $0x10] sm:$0xff]  ;;  %vm2367_vm1 = vmmov 0   ;;  %vm463_vm2 = vcmask 64512   ;;  %s2370_s26 = smov 104  }
  0x7f   :  { %v234_v6 = vld [vmem:[#allocation10 + $0x18] sm:$0xff]  ;;  %v2090_v7 = vpack.c.bf16 %v139_v4, %v138_v2  ;;  %v140_v9 = vld [vmem:[#allocation8 + $0x10] sm:$0xff]  ;;  %v134_v11 = vld [vmem:[#allocation5] sm:$0xff]  ;;  %s2371_s17 = smov 16   ;;  %vm1754_vm3 = vcmask 130048   ;;  %vm1757_vm4 = vcmask 195584  }
  0x80   :  { %v2102_v8 = vpack.c.bf16 %v234_v6, %v233_v5  ;;  %v141_v10 = vld [vmem:[#allocation8 + $0x18] sm:$0xff]  ;;  %2099 = vmatprep.subr.bf16.mxu1 %v2098_v3  ;;  %1985 = vmatprep.mubr.msk.f32.mxu1 %vm149_vm0, %v134_v11  ;;  %v132_v13 = vld [vmem:[#allocation2] sm:$0xff]  ;;  %v135_v14 = vld [vmem:[#allocation5 + $0x8] sm:$0xff]  ;;  %s2373_s19 = smov [#allocation14]  }
  0x81   :  { %v2094_v12 = vpack.c.bf16 %v141_v10, %v140_v9  ;;  %2101 = vmatpush3.bf16.msra.mxu1 %v2098_v3  ;;  %2091 = vmatprep.subr.bf16.mxu0 %v2090_v7  ;;  %v133_v15 = vld [vmem:[#allocation2 + $0x8] sm:$0xff]  ;;  %v323_v17 = vld [vmem:[#allocation11] sm:$0xff]  ;;  %v324_v18 = vld [vmem:[#allocation11 + $0x8] sm:$0xff]  ;;  %s1859_s21 = sshll.u32 %s2373_s19, 4  ;;  %s1860_s21 = int_to_ptr.vmem [resolvable:$true] %s1859_s21 }
  0x82   :  { %2093 = vmatpush3.bf16.msra.mxu0 %v2090_v7  ;;  %2103 = vmatprep.subr.bf16.mxu1 %v2102_v8  ;;  %v2106_v19 = vpack.c.bf16 %v324_v18, %v323_v17  ;;  %v325_v20 = vld [vmem:[#allocation11 + $0x10] sm:$0xff]  ;;  %v326_v21 = vld [vmem:[#allocation11 + $0x18] sm:$0xff]  ;;  %v1880_v48 = vld [vmem:[#allocation13] ss:$0 sm:$0xff]  ;;  %s2325_s22 = scalar_lea.vmem %s1860_s21, 256  ;;  %p2330_p1 = scmp.lt.s32.totalorder %s1860_s21, %s1860_s21 }
  0x83   :  { %2095 = vmatprep.subr.bf16.mxu0 %v2094_v12  ;;  %1974 = vmatprep.mubr.msk.f32.mxu0 %vm149_vm0, %v132_v13  ;;  %v2110_v22 = vpack.c.bf16 %v326_v21, %v325_v20  ;;  %v136_v23 = vld [vmem:[#allocation7] sm:$0xff]  ;;  %v137_v25 = vld [vmem:[#allocation7 + $0x8] sm:$0xff]  ;;  %p2326_p0 = scmp.ne.s32.totalorder %s1860_s21, %s2325_s22  ;;  %p2331_p2 = scmp.lt.s32.totalorder %s2325_s22, %s2325_s22 }
  0x84   :  { %v1877_v24 = vld [vmem:[%s2739_s6] ss:$0 sm:$0xff]  ;;  %s2368_s6 = smov 120  }
  0x85   :  { %2105 = vmatpush3.bf16.msra.mxu1 %v2102_v8  ;;  %v1874_v27 = vld [vmem:[%s2737_s4] ss:$0 sm:$0xff]  ;;  %s2369_s4 = smov 112   ;;  %p2332_p3 = por %p2331_p2, %p2330_p1 }
  0x86   :  { %2097 = vmatpush3.bf16.msra.mxu0 %v2094_v12  ;;  %1999 = vmatprep.subr.mxu1 %v2366_v16 }
  0x87   :  { %2107 = vmatprep.subr.bf16.mxu0 %v2106_v19  ;;  %p2333_p4 = pnand %p2332_p3, %p2326_p0 }
  0x88   :  { %1986 = vmatmul.mubr.msk.f32.vlgmr.msra.gmra.mrb[0].mxu1 %vm149_vm0, %v135_v14 }
  0x89   :  { %1975 = vmatmul.mubr.msk.f32.vlgmr.msra.gmra.mrb[0].mxu0 %vm149_vm0, %v133_v15  ;;  %2001 = vmatprep.mubr.msk.f32.mxu1 %vm2367_vm1, %v2366_v16 }
  0x8a   :  { %2109 = vmatpush3.bf16.msra.mxu0 %v2106_v19  ;;  %1996 = vmatprep.mubr.msk.f32.mxu0 %vm149_vm0, %v136_v23 }
  0x8b   :  { %2111 = vmatprep.subr.bf16.mxu0 %v2110_v22 }
  0x8e   :  { %2113 = vmatpush3.bf16.msra.mxu0 %v2110_v22 }
  0x8f   :  { %2019 = vmatprep.subr.mxu0 %v2366_v16 }
  0x91   :  { %1997 = vmatmul.mubr.msk.f32.vlgmr.msra.gmra.mrb[2].mxu0 %vm149_vm0, %v137_v25 }
  0x92   :  { %2021 = vmatprep.mubr.msk.f32.mxu0 %vm2367_vm1, %v2366_v16 }
 0x15b   :  { %v1987_v26 = vpop.f32.mrb[0].mxu1 }
 0x15c   :  { %v320_v28 = vadd.f32 %v1987_v26, %v1877_v24  ;;  %v314_v29 = vpop.f32.mrb[1].mxu1  ;;  %v1976_v30 = vpop.f32.mrb[0].mxu0 }
 0x15d   :  { %v315_v31 = vadd.f32 %v1877_v24, %v314_v29  ;;  %v222_v32 = vpop.f32.mrb[1].mxu0  ;;  %v228_v33 = vadd.f32 %v1976_v30, %v1874_v27 }
 0x15e   :  { %433 = vrot.lane.b32.xlu1 %v320_v28, %s2368_s6  ;;  %v223_v34 = vadd.f32 %v1874_v27, %v222_v32 }
 0x15f   :  { %431 = vrot.lane.b32.xlu0 %v315_v31, %s2368_s6  ;;  %2000 = vmatpush3.xpose.msk.msra.mxu1 %vm463_vm2, %v315_v31 }
 0x160   :  { %2004 = vmatprep.subr.mxu1 %v2366_v16 }
 0x162   :  { %419 = vrot.lane.b32.xlu1 %v228_v33, %s2368_s6  ;;  %2002 = vmatmul.mubr.msk.f32.vlgmr.msra.gmra.mrb[2].mxu1 %vm463_vm2, %v223_v34 }
 0x163   :  { %417 = vrot.lane.b32.xlu0 %v223_v34, %s2368_s6  ;;  %2005 = vmatpush3.xpose.msk.msra.mxu1 %vm463_vm2, %v320_v28 }
 0x164   :  { %2006 = vmatprep.mubr.msk.f32.mxu1 %vm2367_vm1, %v2366_v16  ;;  %2009 = vmatprep.subr.mxu1 %v2366_v16  ;;  %v1998_v47 = vpop.f32.mrb[2].mxu0 }
 0x165   :  { %v2627_v49 = vadd.f32 %v1998_v47, %v1880_v48  ;;  %v406_v50 = vpop.f32.mrb[3].mxu0 }
 0x166   :  { %437 = vrot.lane.b32.xlu1 %v320_v28, %s2369_s4  ;;  %2007 = vmatmul.mubr.msk.f32.vlgmr.msra.gmra.mrb[4].mxu1 %vm463_vm2, %v228_v33  ;;  %v2629_v51 = vadd.f32 %v1880_v48, %v406_v50 }
 0x167   :  { %435 = vrot.lane.b32.xlu0 %v315_v31, %s2369_s4  ;;  %2011 = vmatprep.mubr.msk.f32.mxu1 %vm2367_vm1, %v2366_v16 }
 0x16a   :  { %423 = vrot.lane.b32.xlu1 %v228_v33, %s2369_s4 }
 0x16b   :  { %421 = vrot.lane.b32.xlu0 %v223_v34, %s2369_s4 }
 0x16e   :  { %441 = vrot.lane.b32.xlu1 %v320_v28, %s2370_s26 }
 0x16f   :  { %439 = vrot.lane.b32.xlu0 %v315_v31, %s2370_s26 }
 0x172   :  { %427 = vrot.lane.b32.xlu1 %v228_v33, %s2370_s26 }
 0x173   :  { %425 = vrot.lane.b32.xlu0 %v223_v34, %s2370_s26 }
 0x1d0   :  { %v434_v35 = vpop.permute.xlu1 %433 }
 0x1d1   :  { %v432_v36 = vpop.permute.xlu0 %431 }
 0x1d2   :  { %2010 = vmatpush3.xpose.msk.msra.mxu1 %vm463_vm2, %v432_v36 }
 0x1d3   :  { %2014 = vmatprep.subr.mxu1 %v2366_v16 }
 0x1d4   :  { %v420_v37 = vpop.permute.xlu1 %419 }
 0x1d5   :  { %v418_v38 = vpop.permute.xlu0 %417 }
 0x1d6   :  { %2012 = vmatmul.mubr.msk.f32.vlgmr.msra.gmra.mrb[6].mxu1 %vm463_vm2, %v418_v38 }
 0x1d7   :  { %2015 = vmatpush3.xpose.msk.msra.mxu1 %vm463_vm2, %v434_v35  ;;  %2016 = vmatprep.mubr.msk.f32.mxu1 %vm2367_vm1, %v2366_v16 }
 0x1d8   :  { %v438_v39 = vpop.permute.xlu1 %437  ;;  %2024 = vmatprep.subr.mxu1 %v2366_v16 }
 0x1d9   :  { %v436_v40 = vpop.permute.xlu0 %435 }
 0x1da   :  { %2017 = vmatmul.mubr.msk.f32.vlgmr.msra.gmra.mrb[8].mxu1 %vm463_vm2, %v420_v37  ;;  %2020 = vmatpush3.xpose.msk.msra.mxu0 %vm463_vm2, %v436_v40 }
 0x1db   :  { %2025 = vmatpush3.xpose.msk.msra.mxu1 %vm463_vm2, %v438_v39  ;;  %2026 = vmatprep.mubr.msk.f32.mxu1 %vm2367_vm1, %v2366_v16 }
 0x1dc   :  { %v424_v41 = vpop.permute.xlu1 %423  ;;  %2034 = vmatprep.subr.mxu1 %v2366_v16  ;;  %2029 = vmatprep.subr.mxu0 %v2366_v16 }
 0x1dd   :  { %v422_v42 = vpop.permute.xlu0 %421 }
 0x1de   :  { %2022 = vmatmul.mubr.msk.f32.vlgmr.msra.gmra.mrb[4].mxu0 %vm463_vm2, %v422_v42  ;;  %2027 = vmatmul.mubr.msk.f32.vlgmr.msra.gmra.mrb[10].mxu1 %vm463_vm2, %v424_v41 }
 0x1df   :  { %2036 = vmatprep.mubr.msk.f32.mxu1 %vm2367_vm1, %v2366_v16  ;;  %2031 = vmatprep.mubr.msk.f32.mxu0 %vm2367_vm1, %v2366_v16 }
 0x1e0   :  { %v442_v43 = vpop.permute.xlu1 %441 }
 0x1e1   :  { %v440_v44 = vpop.permute.xlu0 %439  ;;  %2035 = vmatpush3.xpose.msk.msra.mxu1 %vm463_vm2, %v442_v43 }
 0x1e2   :  { %2030 = vmatpush3.xpose.msk.msra.mxu0 %vm463_vm2, %v440_v44  ;;  %2044 = vmatprep.subr.mxu1 %v2366_v16 }
 0x1e3   :  { %2039 = vmatprep.subr.mxu0 %v2366_v16 }
 0x1e4   :  { %v428_v45 = vpop.permute.xlu1 %427 }
 0x1e5   :  { %v426_v46 = vpop.permute.xlu0 %425  ;;  %2037 = vmatmul.mubr.msk.f32.vlgmr.msra.gmra.mrb[12].mxu1 %vm463_vm2, %v428_v45 }
 0x1e6   :  { %2032 = vmatmul.mubr.msk.f32.vlgmr.msra.gmra.mrb[6].mxu0 %vm463_vm2, %v426_v46  ;;  %2046 = vmatprep.mubr.msk.f32.mxu1 %vm2367_vm1, %v2366_v16 }
 0x1e7   :  { %2041 = vmatprep.mubr.msk.f32.mxu0 %vm2367_vm1, %v2366_v16  ;;  %2045 = vmatpush3.msra.mxu1 %v2627_v49 }
 0x1e8   :  { %2040 = vmatpush3.msra.mxu0 %v2629_v51  ;;  %2054 = vmatprep.subr.mxu1 %v2366_v16 }
 0x1e9   :  { %2049 = vmatprep.subr.mxu0 %v2366_v16 }
 0x235   :  { %v534_v52 = vpop.f32.mrb[2].mxu1 }
 0x236   :  { %v2003_v53 = vpop.f32.mrb[3].mxu1  ;;  %v1056_v54 = vsel %vm463_vm2, %v534_v52, -inf }
 0x237   :  { %1057 = vmax.xlane.f32.xlu0 %v1056_v54 }
 0x239   :  { %v608_v55 = vpop.f32.mrb[4].mxu1 }
 0x23a   :  { %v2008_v56 = vpop.f32.mrb[5].mxu1  ;;  %v1059_v57 = vsel %vm463_vm2, %v608_v55, -inf }
 0x23b   :  { %1060 = vmax.xlane.f32.xlu1 %v1059_v57 }
 0x2a9   :  { %v682_v58 = vpop.f32.mrb[6].mxu1 }
 0x2aa   :  { %v2013_v59 = vpop.f32.mrb[7].mxu1  ;;  %v1062_v60 = vsel %vm463_vm2, %v682_v58, -inf }
 0x2ab   :  { %1063 = vmax.xlane.f32.xlu0 %v1062_v60 }
 0x2ad   :  { %v756_v61 = vpop.f32.mrb[8].mxu1 }
 0x2ae   :  { %v2018_v62 = vpop.f32.mrb[9].mxu1  ;;  %v1065_v63 = vsel %vm463_vm2, %v756_v61, -inf }
 0x2af   :  { %1066 = vmax.xlane.f32.xlu0 %v1065_v63 }
 0x2b1   :  { %v830_v0 = vpop.f32.mrb[4].mxu0  ;;  %v904_v1 = vpop.f32.mrb[10].mxu1 }
 0x2b2   :  { %v2023_v2 = vpop.f32.mrb[5].mxu0  ;;  %v2028_v3 = vpop.f32.mrb[11].mxu1  ;;  %v1068_v4 = vsel %vm463_vm2, %v830_v0, -inf  ;;  %v1071_v5 = vsel %vm463_vm2, %v904_v1, -inf }
 0x2b3   :  { %1069 = vmax.xlane.f32.xlu1 %v1068_v4  ;;  %1072 = vmax.xlane.f32.xlu0 %v1071_v5 }
 0x2b8   :  { %v1052_v6 = vpop.f32.mrb[12].mxu1 }
 0x2b9   :  { %v978_v7 = vpop.f32.mrb[6].mxu0  ;;  %v2038_v8 = vpop.f32.mrb[13].mxu1  ;;  %v1077_v9 = vsel %vm463_vm2, %v1052_v6, -inf }
 0x2ba   :  { %v2033_v10 = vpop.f32.mrb[7].mxu0  ;;  %1078 = vmax.xlane.f32.xlu0 %v1077_v9  ;;  %v1074_v11 = vsel %vm463_vm2, %v978_v7, -inf }
 0x2bb   :  { %1075 = vmax.xlane.f32.xlu1 %v1074_v11 }
 0x2c4   :  { %v1058_v15 = vpop.xlane.xlu0 %1057 }
 0x2c5   :  { %v1080_v17 = vsub.f32 %v534_v52, %v1058_v15 }
 0x2c7   :  { %v1088_v18 = vmul.f32 1.442695, %v1080_v17 }
 0x2c8   :  { %v1061_v12 = vpop.xlane.xlu1 %1060 }
 0x2c9   :  { %v1081_v13 = vsub.f32 %v608_v55, %v1061_v12 }
 0x2cb   :  { %v1090_v14 = vmul.f32 1.442695, %v1081_v13 }
 0x2cc   :  { %445 = vrot.lane.b32.xlu1 %v2629_v51, %s2368_s6 }
 0x2cd   :  { %2139 = vpow2.f32 %v1090_v14 }
 0x2ce   :  { %2141 = vpow2.f32 %v1088_v18 }
 0x2d0   :  { %451 = vrot.lane.b32.xlu1 %v2629_v51, %s2369_s4  ;;  %447 = vrot.lane.b32.xlu0 %v2627_v49, %s2368_s6 }
 0x2d4   :  { %453 = vrot.lane.b32.xlu1 %v2627_v49, %s2369_s4 }
 0x2d7   :  { %v2140_v19 = vpop.eup %2139 }
 0x2d8   :  { %v1107_v20 = vsel %vm463_vm2, %v2140_v19, 0.0  ;;  %v2142_v21 = vpop.eup %2141 }
 0x2d9   :  { %v1104_v22 = vsel %vm463_vm2, %v2142_v21, 0.0 }
 0x2ef   :  { %1108 = vadd.xlane.f32.xlu0 %v1107_v20 }
 0x2f8   :  { %1105 = vadd.xlane.f32.xlu1 %v1104_v22 }
 0x338   :  { %v1064_v23 = vpop.xlane.xlu0 %1063 }
 0x339   :  { %v1082_v24 = vsub.f32 %v682_v58, %v1064_v23 }
 0x33b   :  { %v1092_v25 = vmul.f32 1.442695, %v1082_v24  ;;  %v1760_v24 = vld [vmem:[%s2742_s9] sm:$0xff] }
 0x33c   :  { %v1067_v26 = vpop.xlane.xlu0 %1066 }
 0x33d   :  { %2143 = vpow2.f32 %v1092_v25  ;;  %v1083_v27 = vsub.f32 %v756_v61, %v1067_v26  ;;  %v1762_v25 = vld [vmem:[%s2742_s9 + $0x10] sm:$0xff] }
 0x33f   :  { %v1094_v28 = vmul.f32 1.442695, %v1083_v27  ;;  %v1763_v27 = vld [vmem:[%s2742_s9 + $0x18] sm:$0xff] }
 0x340   :  { %v1070_v29 = vpop.xlane.xlu1 %1069  ;;  %v1073_v30 = vpop.xlane.xlu0 %1072 }
 0x341   :  { %2145 = vpow2.f32 %v1094_v28  ;;  %v1084_v31 = vsub.f32 %v830_v0, %v1070_v29  ;;  %v1085_v32 = vsub.f32 %v904_v1, %v1073_v30  ;;  %v2118_v28 = vpack.c.bf16 %v1763_v27, %v1762_v25 }
 0x343   :  { %v1096_v33 = vmul.f32 1.442695, %v1084_v31  ;;  %v1098_v34 = vmul.f32 1.442695, %v1085_v32 }
 0x345   :  { %2147 = vpow2.f32 %v1096_v33 }
 0x346   :  { %2149 = vpow2.f32 %v1098_v34 }
 0x347   :  { %v2144_v35 = vpop.eup %2143  ;;  %v1079_v36 = vpop.xlane.xlu0 %1078 }
 0x348   :  { %v1087_v37 = vsub.f32 %v1052_v6, %v1079_v36  ;;  %v1076_v38 = vpop.xlane.xlu1 %1075  ;;  %v1110_v39 = vsel %vm463_vm2, %v2144_v35, 0.0 }
 0x349   :  { %v1086_v40 = vsub.f32 %v978_v7, %v1076_v38  ;;  %1111 = vadd.xlane.f32.xlu1 %v1110_v39 }
 0x34a   :  { %v1102_v41 = vmul.f32 1.442695, %v1087_v37 }
 0x34b   :  { %v2146_v42 = vpop.eup %2145  ;;  %v1100_v43 = vmul.f32 1.442695, %v1086_v40  ;;  %v448_v56 = vpop.permute.xlu0 %447 }
 0x34c   :  { %2151 = vpow2.f32 %v1102_v41  ;;  %v1113_v44 = vsel %vm463_vm2, %v2146_v42, 0.0  ;;  %v446_v55 = vpop.permute.xlu1 %445 }
 0x34d   :  { %2153 = vpow2.f32 %v1100_v43  ;;  %1114 = vadd.xlane.f32.xlu0 %v1113_v44 }
 0x34f   :  { %v2148_v45 = vpop.eup %2147 }
 0x350   :  { %v2150_v46 = vpop.eup %2149  ;;  %v1116_v47 = vsel %vm463_vm2, %v2148_v45, 0.0  ;;  %v452_v57 = vpop.permute.xlu1 %451 }
 0x351   :  { %1117 = vadd.xlane.f32.xlu1 %v1116_v47  ;;  %v1119_v48 = vsel %vm463_vm2, %v2150_v46, 0.0 }
 0x352   :  { %1120 = vadd.xlane.f32.xlu0 %v1119_v48 }
 0x354   :  { %v454_v59 = vpop.permute.xlu1 %453 }
 0x356   :  { %v2657_v50 = vpop.eup %2151 }
 0x357   :  { %v2659_v52 = vpop.eup %2153  ;;  %v1125_v53 = vsel %vm463_vm2, %v2657_v50, 0.0 }
 0x358   :  { %1126 = vadd.xlane.f32.xlu0 %v1125_v53  ;;  %v1122_v54 = vsel %vm463_vm2, %v2659_v52, 0.0 }
 0x359   :  { %1123 = vadd.xlane.f32.xlu1 %v1122_v54 }
 0x36a   :  { %459 = vrot.lane.b32.xlu1 %v2627_v49, %s2370_s26 }
 0x36e   :  { %457 = vrot.lane.b32.xlu0 %v2629_v51, %s2370_s26 }
 0x37c   :  { %v1109_v58 = vpop.xlane.xlu0 %1108 }
 0x37d   :  { %2155 = vrcp.f32 %v1109_v58 }
 0x385   :  { %v1106_v60 = vpop.xlane.xlu1 %1105 }
 0x386   :  { %2157 = vrcp.f32 %v1106_v60 }
 0x387   :  { %v2156_v61 = vpop.eup %2155 }
 0x388   :  { %v1137_v62 = vmul.f32 %v2156_v61, %v2140_v19 }
 0x38a   :  { %2047 = vmatmul.mubr.msk.f32.vlgmr.msra.gmra.mrb[14].mxu1 %vm463_vm2, %v1137_v62 }
 0x38b   :  { %2055 = vmatpush3.msra.mxu1 %v448_v56  ;;  %2056 = vmatprep.mubr.msk.f32.mxu1 %vm2367_vm1, %v2366_v16 }
 0x38c   :  { %2064 = vmatprep.subr.mxu1 %v2366_v16 }
 0x390   :  { %v2158_v49 = vpop.eup %2157 }
 0x391   :  { %v1136_v51 = vmul.f32 %v2158_v49, %v2142_v21 }
 0x393   :  { %2042 = vmatmul.mubr.msk.f32.vlgmr.msra.gmra.mrb[8].mxu0 %vm463_vm2, %v1136_v51 }
 0x394   :  { %2050 = vmatpush3.msra.mxu0 %v446_v55  ;;  %2051 = vmatprep.mubr.msk.f32.mxu0 %vm2367_vm1, %v2366_v16  ;;  %v1907_v55 = vld [vmem:[%s2743_s10] ss:$0 sm:$0xff] }
 0x395   :  { %2059 = vmatprep.subr.mxu0 %v2366_v16 }
 0x3d6   :  { %v1112_v63 = vpop.xlane.xlu1 %1111 }
 0x3d7   :  { %2159 = vrcp.f32 %v1112_v63 }
 0x3da   :  { %v1115_v0 = vpop.xlane.xlu0 %1114 }
 0x3db   :  { %2161 = vrcp.f32 %v1115_v0 }
 0x3de   :  { %v1118_v1 = vpop.xlane.xlu1 %1117 }
 0x3df   :  { %2163 = vrcp.f32 %v1118_v1  ;;  %v1121_v2 = vpop.xlane.xlu0 %1120 }
 0x3e0   :  { %2165 = vrcp.f32 %v1121_v2 }
 0x3e1   :  { %v2160_v3 = vpop.eup %2159 }
 0x3e2   :  { %v1138_v4 = vmul.f32 %v2160_v3, %v2144_v35 }
 0x3e4   :  { %2052 = vmatmul.mubr.msk.f32.vlgmr.msra.gmra.mrb[10].mxu0 %vm463_vm2, %v1138_v4 }
 0x3e5   :  { %v2162_v5 = vpop.eup %2161  ;;  %2060 = vmatpush3.msra.mxu0 %v452_v57  ;;  %v1127_v6 = vpop.xlane.xlu0 %1126  ;;  %2061 = vmatprep.mubr.msk.f32.mxu0 %vm2367_vm1, %v2366_v16 }
 0x3e6   :  { %v1139_v7 = vmul.f32 %v2162_v5, %v2146_v42  ;;  %2167 = vrcp.f32 %v1127_v6  ;;  %v1124_v8 = vpop.xlane.xlu1 %1123  ;;  %2069 = vmatprep.subr.mxu0 %v2366_v16 }
 0x3e7   :  { %2169 = vrcp.f32 %v1124_v8 }
 0x3e8   :  { %2057 = vmatmul.mubr.msk.f32.vlgmr.msra.gmra.mrb[16].mxu1 %vm463_vm2, %v1139_v7 }
 0x3e9   :  { %v2164_v9 = vpop.eup %2163  ;;  %2065 = vmatpush3.msra.mxu1 %v454_v59  ;;  %2066 = vmatprep.mubr.msk.f32.mxu1 %vm2367_vm1, %v2366_v16  ;;  %v458_v14 = vpop.permute.xlu0 %457 }
 0x3ea   :  { %v2166_v10 = vpop.eup %2165  ;;  %v1140_v11 = vmul.f32 %v2164_v9, %v2148_v45  ;;  %2074 = vmatprep.subr.mxu1 %v2366_v16  ;;  %v460_v13 = vpop.permute.xlu1 %459 }
 0x3eb   :  { %v1141_v12 = vmul.f32 %v2166_v10, %v2150_v46 }
 0x3ec   :  { %2062 = vmatmul.mubr.msk.f32.vlgmr.msra.gmra.mrb[12].mxu0 %vm463_vm2, %v1140_v11 }
 0x3ed   :  { %2067 = vmatmul.mubr.msk.f32.vlgmr.msra.gmra.mrb[18].mxu1 %vm463_vm2, %v1141_v12  ;;  %2070 = vmatpush3.msra.mxu0 %v458_v14 }
 0x3ee   :  { %2075 = vmatpush3.msra.mxu1 %v460_v13  ;;  %2076 = vmatprep.mubr.msk.f32.mxu1 %vm2367_vm1, %v2366_v16 }
 0x3ef   :  { %2071 = vmatprep.mubr.msk.f32.mxu0 %vm2367_vm1, %v2366_v16  ;;  %v1761_v16 = vld [vmem:[%s2742_s9 + $0x8] sm:$0xff]  ;;  %s2372_s9 = smov 24  }
 0x3f0   :  { %v2168_v15 = vpop.eup %2167  ;;  %v2114_v26 = vpack.c.bf16 %v1761_v16, %v1760_v24 }
 0x3f1   :  { %v2170_v17 = vpop.eup %2169  ;;  %v1143_v18 = vmul.f32 %v2168_v15, %v2657_v50 }
 0x3f2   :  { %v1142_v19 = vmul.f32 %v2170_v17, %v2659_v52  ;;  %2115 = vmatprep.subr.bf16.mxu0 %v2114_v26 }
 0x3f3   :  { %2077 = vmatmul.mubr.msk.f32.vlgmr.msra.gmra.mrb[20].mxu1 %vm463_vm2, %v1143_v18 }
 0x3f4   :  { %2072 = vmatmul.mubr.msk.f32.vlgmr.msra.gmra.mrb[14].mxu0 %vm463_vm2, %v1142_v19 }
 0x3f5   :  { %2117 = vmatpush3.bf16.msra.mxu0 %v2114_v26 }
 0x3f6   :  { %2119 = vmatprep.subr.bf16.mxu0 %v2118_v28 }
 0x3f9   :  { %2121 = vmatpush3.bf16.msra.mxu0 %v2118_v28 }
 0x45d   :  { %v1286_v20 = vpop.f32.mrb[14].mxu1 }
 0x45e   :  { %v2048_v21 = vpop.f32.mrb[15].mxu1 }
 0x466   :  { %v1213_v22 = vpop.f32.mrb[8].mxu0 }
 0x467   :  { %v2043_v23 = vpop.f32.mrb[9].mxu0 }
 0x4b7   :  { %v1359_v29 = vpop.f32.mrb[10].mxu0 }
 0x4b8   :  { %v2053_v30 = vpop.f32.mrb[11].mxu0  ;;  %1730 = vrot.lane.b32.xlu0 %v1359_v29, %s2360_s30 }
 0x4bb   :  { %v1432_v31 = vpop.f32.mrb[16].mxu1 }
 0x4bc   :  { %1732 = vrot.lane.b32.xlu1 %v1432_v31, %s2360_s30  ;;  %v2058_v32 = vpop.f32.mrb[17].mxu1 }
 0x4bf   :  { %v1505_v33 = vpop.f32.mrb[12].mxu0 }
 0x4c0   :  { %v1578_v34 = vpop.f32.mrb[18].mxu1  ;;  %v2063_v35 = vpop.f32.mrb[13].mxu0  ;;  %1738 = vrot.lane.b32.xlu0 %v1505_v33, %s2371_s17 }
 0x4c1   :  { %1740 = vrot.lane.b32.xlu1 %v1578_v34, %s2371_s17  ;;  %v2068_v36 = vpop.f32.mrb[19].mxu1 }
 0x4c6   :  { %v1724_v37 = vpop.f32.mrb[20].mxu1 }
 0x4c7   :  { %v1651_v38 = vpop.f32.mrb[14].mxu0  ;;  %1748 = vrot.lane.b32.xlu1 %v1724_v37, %s2372_s9  ;;  %v2078_v39 = vpop.f32.mrb[21].mxu1 }
 0x4c8   :  { %1746 = vrot.lane.b32.xlu0 %v1651_v38, %s2372_s9  ;;  %v2073_v40 = vpop.f32.mrb[15].mxu0 }
 0x52a   :  { %v1731_v42 = vpop.permute.xlu0 %1730 }
 0x52b   :  { %v1752_v45 = vsel %vm463_vm2, %v1213_v22, %v1731_v42 }
 0x52e   :  { %v1733_v41 = vpop.permute.xlu1 %1732 }
 0x52f   :  { %v1753_v47 = vsel %vm463_vm2, %v1286_v20, %v1733_v41 }
 0x532   :  { %v1739_v44 = vpop.permute.xlu0 %1738 }
 0x533   :  { %v1741_v43 = vpop.permute.xlu1 %1740  ;;  %v1755_v48 = vsel %vm1754_vm3, %v1752_v45, %v1739_v44 }
 0x534   :  { %v1756_v52 = vsel %vm1754_vm3, %v1753_v47, %v1741_v43 }
 0x539   :  { %v1749_v46 = vpop.permute.xlu1 %1748 }
 0x53a   :  { %v1747_v50 = vpop.permute.xlu0 %1746  ;;  %v1759_v54 = vsel %vm1757_vm4, %v1756_v52, %v1749_v46 }
 0x53b   :  { %v1758_v53 = vsel %vm1757_vm4, %v1755_v48, %v1747_v50 }
 0x53c   :  { %2087 = vmatprep.mubr.msk.f32.mxu0 %vm149_vm0, %v1758_v53 }
 0x53d   :  { %2088 = vmatmul.mubr.msk.f32.vlgmr.msra.gmra.mrb[16].mxu0 %vm149_vm0, %v1759_v54 }
 0x610   :  { %v2089_v56 = vpop.f32.mrb[16].mxu0 }
 0x611   :  { %v1849_v57 = vadd.f32 %v2089_v56, %v1907_v55  ;;  %v1843_v58 = vpop.f32.mrb[17].mxu0 }
 0x612   :  { %v1844_v59 = vadd.f32 %v1907_v55, %v1843_v58 }
 0x613   :  { %1853 = vst.msk [vmem:[#allocation14 + $0x8] sm:$0xff] %vm149_vm0, %v1849_v57 }
 0x614   :  { %1852 = vst.msk [vmem:[#allocation14] sm:$0xff] %vm149_vm0, %v1844_v59 }
 0x615   :  { %2336 = shalt.err (!%p2333_p4)
}
 0x616   :  { %s2337_s27 = scalar_lea.hbm %s2744_s11, 256 }
 0x617   :  { %p2338_p5 = scmp.ne.s32.totalorder %s2744_s11, %s2337_s27  ;;  %p2341_p6 = scmp.lt.u32.totalorder %s2337_s27, %s2744_s11 }
 0x619   :  { %p2343_p7 = pnand %p2341_p6, %p2338_p5 }
 0x61b   :  { %2346 = shalt.err (!%p2343_p7)
}
 0x61c   :  { %1865 = dma.vmem_to_hbm [thread:$0]  %s1860_s21, 256, %s2744_s11, [#allocation4], %s2359_s29, %s2359_s29, %s2360_s30  }
 0x61d   :  { %2355 = dma.done.wait [#allocation4], 256  }
 0x61e   :  { %2356 = vsyncadd [#allocation4], 4294967040 }
 0x61f   :  { %1869 = vsyncpa [#allocation3], 1 }
 0x620   :  { %1870 = vsyncpa [#allocation6], 1 }
 0x621   :  { %1871 = vsyncpa [#allocation9], 1 }
 0x622   :  { %1872 = vsyncpa [#allocation12], 1 }
 0x623   :  { %1873 = vsyncpa [#allocation4], 1 }

</bundles_post_ra>
